<compile_context>
chip_gen: v7x
topology: tpu7x:2x2x1
jax: 0.10.0
libtpu: 0.0.40
codegen_flags: <defaults>
</compile_context>

<pallas_src>
import functools

import jax
import jax.numpy as jnp
from jax.experimental import pallas as pl
from jax.experimental.pallas import tpu as pltpu

BN_EPS = 1e-5
LANE = 128


def _round_up(x, m):
    return ((x + m - 1) // m) * m


def _device_budgets():
    """(streamed-weight-pair budget, vmem_limit cap) from VMEM capacity."""
    try:
        cap = pltpu.get_tpu_info().vmem_capacity_bytes
    except Exception:
        cap = 64 << 20  # conservative (v7x-sized) if the query is unavailable
    if cap >= (100 << 20):       # v5e / v6e: 128 MiB physical VMEM
        return 24 << 20, 100 << 20
    return 10 << 20, 48 << 20    # v7x: 64 MiB physical VMEM


# ---------------------------------------------------------------------------
# Kernel A: dense stack  z -> h   ((Linear + BatchNorm1d(train) + Tanh) x L)
# Runs once (grid=(1,)), everything VMEM-resident; all math in f32 so BN with
# tiny batches does not amplify weight-quantization error.
# ---------------------------------------------------------------------------
def _make_hidden_kernel(num_dense_layers: int):
    def kernel(*refs):
        # refs: z, (w, b, gamma, beta) per layer, h_out
        h = refs[0][...].astype(jnp.float32)
        idx = 1
        for _ in range(num_dense_layers):
            w = refs[idx][...]
            b = refs[idx + 1][...]
            gamma = refs[idx + 2][...]
            beta = refs[idx + 3][...]
            idx += 4
            h = jnp.dot(h, w, preferred_element_type=jnp.float32) + b
            # BatchNorm1d, training mode (batch mean, biased batch variance),
            # folded into a single scale/shift FMA.  Padded feature columns
            # are exactly zero pre-BN and stay zero post-BN/Tanh -> inert.
            mu = jnp.mean(h, axis=0, keepdims=True)
            var = jnp.mean((h - mu) * (h - mu), axis=0, keepdims=True)
            scale = gamma * jax.lax.rsqrt(var + BN_EPS)
            shift = beta - mu * scale
            # Tanh; Dropout(p=0.0) -> identity.
            h = jnp.tanh(h * scale + shift)
        refs[idx][...] = h

    return kernel


# ---------------------------------------------------------------------------
# Kernel B: fused output linear  h @ [Wa_sym | Wx] + [ba_sym | bx]
# Gridded over output-column tiles; W_out is streamed (double-buffered DMA)
# tile-by-tile.  No cross-step state -> the grid axis is megacore "parallel".
# ---------------------------------------------------------------------------
def _out_tile_kernel(h_ref, w_ref, b_ref, out_ref):
    h = h_ref[...].astype(w_ref.dtype)    # bf16 x bf16 on the MXU, f32 acc
    out_ref[...] = (
        jnp.dot(h, w_ref[...], preferred_element_type=jnp.float32) + b_ref[...]
    )


def init_generator_params(key, conv_dim, z_dim, num_nodes, num_features):
    """Deterministic parameter init (shapes match the PyTorch module), f32."""
    params = {"dense": [], "adj": None, "x": None}
    dims = [z_dim] + list(conv_dim)
    for (c0, c1) in zip(dims[:-1], dims[1:]):
        key, kw, kb = jax.random.split(key, 3)
        bound = 1.0 / float(jnp.sqrt(c0))
        w = jax.random.uniform(kw, (c0, c1), jnp.float32, -bound, bound)
        b = jax.random.uniform(kb, (1, c1), jnp.float32, -bound, bound)
        gamma = jnp.ones((1, c1), jnp.float32)   # BatchNorm1d default weight
        beta = jnp.zeros((1, c1), jnp.float32)   # BatchNorm1d default bias
        params["dense"].append((w, b, gamma, beta))

    c_last = conv_dim[-1]
    bound = 1.0 / float(jnp.sqrt(c_last))
    key, kw, kb = jax.random.split(key, 3)
    wa = jax.random.uniform(kw, (c_last, num_nodes * num_nodes), jnp.float32, -bound, bound)
    ba = jax.random.uniform(kb, (1, num_nodes * num_nodes), jnp.float32, -bound, bound)
    params["adj"] = (wa, ba)

    key, kw, kb = jax.random.split(key, 3)
    wx = jax.random.uniform(kw, (c_last, num_nodes * num_features), jnp.float32, -bound, bound)
    bx = jax.random.uniform(kb, (1, num_nodes * num_features), jnp.float32, -bound, bound)
    params["x"] = (wx, bx)
    return params


def _pick_tile_n(c_out_p, c_last_p, weight_itemsize, pair_budget):
    """Largest multiple of 128 such that (a) the double-buffered
    (c_last_p, tile_n) weight tile pair fits the budget and (b) rounding
    c_out_p up to a multiple of tile_n wastes < ~5% extra columns."""
    max_tile = max(LANE, (pair_budget // (2 * weight_itemsize * c_last_p)) // LANE * LANE)
    max_tile = min(max_tile, c_out_p)
    tile = max_tile
    while tile > LANE:
        padded = _round_up(c_out_p, tile)
        if (padded - c_out_p) <= 0.05 * c_out_p:
            break
        tile -= LANE
    return int(tile)


def prepare_generator_params(params, z_dim, num_nodes, num_features,
                             out_weight_dtype=jnp.bfloat16, tile_n=None):
    """One-time (outside-jit) weight preparation:
       * fold (adj + adj^T)/2 into the adj weights/bias (exact, linear in the
         output features),
       * fuse adj/x output linears into one matmul,
       * zero-pad feature dims to 128 lanes (fused output axis padded only to
         128 plus at most ~5% tile rounding),
       * store the dominant streamed W_out narrow (bf16 by default); the tiny
         dense-stack weights stay f32.
    Returns (prepped_arrays, tile_n)."""
    n, f = num_nodes, num_features
    dense = params["dense"]
    dims = [z_dim] + [int(w.shape[1]) for (w, _, _, _) in dense]
    dims_p = [_round_up(d, LANE) for d in dims]

    dense_p = []
    for l, (w, b, g, be) in enumerate(dense):
        c0, c1 = int(w.shape[0]), int(w.shape[1])
        c0p, c1p = dims_p[l], dims_p[l + 1]
        wp = jnp.zeros((c0p, c1p), jnp.float32).at[:c0, :c1].set(w)
        bp = jnp.zeros((1, c1p), jnp.float32).at[:, :c1].set(b)
        gp = jnp.ones((1, c1p), jnp.float32).at[:, :c1].set(g)
        bep = jnp.zeros((1, c1p), jnp.float32).at[:, :c1].set(be)
        dense_p.append((wp, bp, gp, bep))

    # Fold symmetrization: perm maps flat index i*N+j -> j*N+i (exact fold).
    wa, ba = params["adj"]
    perm = jnp.arange(n * n).reshape(n, n).T.reshape(-1)
    wa_sym = 0.5 * (wa + wa[:, perm])
    ba_sym = 0.5 * (ba + ba[:, perm])
    wx, bx = params["x"]

    c_last = dims[-1]
    c_last_p = dims_p[-1]
    c_out = n * n + n * f
    c_out_p = _round_up(c_out, LANE)
    w_cat = jnp.concatenate([wa_sym, wx], axis=1)      # (c_last, c_out)
    b_cat = jnp.concatenate([ba_sym, bx], axis=1)      # (1, c_out)

    pair_budget, _ = _device_budgets()
    if tile_n is None:
        tile_n = _pick_tile_n(c_out_p, c_last_p,
                              jnp.dtype(out_weight_dtype).itemsize, pair_budget)
    tile_n = int(min(tile_n, c_out_p))
    c_out_pp = _round_up(c_out_p, tile_n)

    w_out = jnp.zeros((c_last_p, c_out_pp), jnp.float32).at[:c_last, :c_out].set(w_cat)
    b_out = jnp.zeros((1, c_out_pp), jnp.float32).at[:, :c_out].set(b_cat)

    prepped = {
        "dense": dense_p,                          # f32 (tiny, VMEM-resident)
        "w_out": w_out.astype(out_weight_dtype),   # bf16 streamed weight
        "b_out": b_out,                            # f32 bias (added once)
    }
    return prepped, tile_n


@functools.partial(jax.jit, static_argnames=("num_nodes", "num_features", "tile_n"))
def generator_forward(z, prepped, num_nodes, num_features, tile_n):
    """Two Pallas calls: (A) dense stack -> h, (B) streamed fused output
    linear gridded over output-column tiles (megacore-parallel)."""
    B = z.shape[0]
    dense = prepped["dense"]
    w_out, b_out = prepped["w_out"], prepped["b_out"]
    num_layers = len(dense)
    d0p = dense[0][0].shape[0]
    dLp = w_out.shape[0]
    c_out_pp = w_out.shape[1]
    num_tiles = c_out_pp // tile_n

    # Zero-pad z to the padded input width (tiny; padded cols are inert).
    z_p = jnp.zeros((B, d0p), jnp.float32).at[:, : z.shape[1]].set(z.astype(jnp.float32))

    # ---- Kernel A: dense stack -> hidden state h (B, dLp) f32 --------------
    const = lambda i: (0, 0)
    a_inputs = [z_p]
    a_specs = [pl.BlockSpec(z_p.shape, const)]
    for (w, b, g, be) in dense:
        a_inputs += [w, b, g, be]
        a_specs += [pl.BlockSpec(w.shape, const), pl.BlockSpec(b.shape, const),
                    pl.BlockSpec(g.shape, const), pl.BlockSpec(be.shape, const)]

    h = pl.pallas_call(
        _make_hidden_kernel(num_layers),
        out_shape=jax.ShapeDtypeStruct((B, dLp), jnp.float32),
        grid_spec=pltpu.PrefetchScalarGridSpec(
            num_scalar_prefetch=0,
            grid=(1,),
            in_specs=a_specs,
            out_specs=pl.BlockSpec((B, dLp), const),
        ),
        compiler_params=pltpu.CompilerParams(
            dimension_semantics=("arbitrary",)),
    )(*a_inputs)

    # ---- Kernel B: streamed fused output linear -----------------------------
    def _nbytes(a):
        return a.size * a.dtype.itemsize

    cost = pl.CostEstimate(
        flops=int(2 * B * dLp * c_out_pp),
        transcendentals=0,
        bytes_accessed=int(_nbytes(w_out) + _nbytes(b_out)
                           + B * dLp * 4 + B * c_out_pp * 4))

    pair_budget, vmem_cap = _device_budgets()
    streamed = (dLp * tile_n * w_out.dtype.itemsize   # weight tile
                + 8 * tile_n * 4                      # bias tile (sublane-padded)
                + B * tile_n * 4)                     # output tile
    resident = B * dLp * 4                            # h (constant-index input)
    vmem_limit = int(min(max(2 * (streamed + resident) + (4 << 20), 16 << 20),
                         vmem_cap))

    out_flat = pl.pallas_call(
        _out_tile_kernel,
        out_shape=jax.ShapeDtypeStruct((B, c_out_pp), jnp.float32),
        grid_spec=pltpu.PrefetchScalarGridSpec(
            num_scalar_prefetch=0,
            grid=(num_tiles,),
            in_specs=[
                pl.BlockSpec((B, dLp), lambda j: (0, 0)),        # h (constant)
                pl.BlockSpec((dLp, tile_n), lambda j: (0, j)),   # streamed W tile
                pl.BlockSpec((1, tile_n), lambda j: (0, j)),     # streamed bias tile
            ],
            out_specs=pl.BlockSpec((B, tile_n), lambda j: (0, j)),
        ),
        compiler_params=pltpu.CompilerParams(
            # No cross-step state -> safe to split output tiles across both
            # TensorCores on v7x (megacore).
            dimension_semantics=("parallel",),
            vmem_limit_bytes=vmem_limit,
        ),
        cost_estimate=cost,
    )(h, w_out, b_out)

    n, f = num_nodes, num_features
    adj_logits = out_flat[:, : n * n].reshape(B, n, n)
    x_logits = out_flat[:, n * n : n * n + n * f].reshape(B, n, f)
    return adj_logits, x_logits


def generator_forward_ref(z, params, num_nodes, num_features,
                          out_weight_dtype=jnp.float32):
    """Pure-JAX mirror of the PyTorch forward (training-mode BatchNorm).
    out_weight_dtype=jnp.bfloat16 mirrors the kernel's narrow storage of the
    hidden state / output weights at the fused final matmul."""
    n, f = num_nodes, num_features
    f32 = jnp.float32
    hp = jax.lax.Precision.HIGHEST
    h = z.astype(f32)
    for (w, b, g, be) in params["dense"]:
        h = jnp.dot(h, w, precision=hp) + b
        mu = jnp.mean(h, axis=0, keepdims=True)
        var = jnp.mean((h - mu) ** 2, axis=0, keepdims=True)
        scale = g * jax.lax.rsqrt(var + BN_EPS)
        h = jnp.tanh(h * scale + (be - mu * scale))
    wa, ba = params["adj"]
    wx, bx = params["x"]
    # Same exact fold as the kernel: symmetrize the weights in f32, then cast.
    perm = jnp.arange(n * n).reshape(n, n).T.reshape(-1)
    wa_s, ba_s = 0.5 * (wa + wa[:, perm]), 0.5 * (ba + ba[:, perm])
    q = lambda a: a.astype(out_weight_dtype).astype(f32)
    adj = (jnp.dot(q(h), q(wa_s), precision=hp) + ba_s).reshape(-1, n, n)
    x = (jnp.dot(q(h), q(wx), precision=hp) + bx).reshape(-1, n, f)
    return adj, x


if __name__ == "__main__":
    # Small shapes consistent with the module.
    B = 2
    z_dim = 16
    conv_dim = [32, 64]
    num_nodes = 8
    num_features = 4

    key = jax.random.PRNGKey(0)
    key, kz, kp = jax.random.split(key, 3)
    z = jax.random.normal(kz, (B, z_dim), jnp.float32)
    params = init_generator_params(kp, conv_dim, z_dim, num_nodes, num_features)

    # One-time weight prep OUTSIDE the jitted forward (fold + fuse + pad + cast).
    prepped, tile_n = prepare_generator_params(params, z_dim, num_nodes, num_features)

    adj_logits, x_logits = generator_forward(
        z, prepped, num_nodes=num_nodes, num_features=num_features, tile_n=tile_n)
    jax.block_until_ready((adj_logits, x_logits))

    assert adj_logits.shape == (B, num_nodes, num_nodes)
    assert x_logits.shape == (B, num_nodes, num_features)

    # Tight check vs a reference mirroring the kernel's numerics (f32 dense
    # stack, bf16 storage of h / W_out at the fused output matmul).
    adj_r16, x_r16 = generator_forward_ref(
        z, params, num_nodes, num_features, out_weight_dtype=jnp.bfloat16)
    assert jnp.allclose(adj_logits, adj_r16, atol=5e-3, rtol=5e-3)
    assert jnp.allclose(x_logits, x_r16, atol=5e-3, rtol=5e-3)

    # Check vs the pure-f32 PyTorch-mirror reference: the only quantization in
    # the kernel is bf16 storage of W_out / h at the final matmul (the dense
    # stack is f32), which perturbs logits only by O(1e-3).
    adj_r32, x_r32 = generator_forward_ref(
        z, params, num_nodes, num_features, out_weight_dtype=jnp.float32)
    assert jnp.allclose(adj_logits, adj_r32, atol=3e-2, rtol=3e-2)
    assert jnp.allclose(x_logits, x_r32, atol=3e-2, rtol=3e-2)

    # Symmetry of adj logits (exact: folded weight columns are identical).
    assert jnp.allclose(adj_logits, jnp.swapaxes(adj_logits, 1, 2), atol=1e-6)

    print("KERNEL_OK")
</pallas_src>

<mosaic_0001>
module attributes {stable_mosaic.version = 11 : i64} {
  func.func @kernel(%arg0: i32, %arg1: memref<2x128xf32, #tpu.memory_space<vmem>>, %arg2: memref<128x128xf32, #tpu.memory_space<vmem>>, %arg3: memref<1x128xf32, #tpu.memory_space<vmem>>, %arg4: memref<1x128xf32, #tpu.memory_space<vmem>>, %arg5: memref<1x128xf32, #tpu.memory_space<vmem>>, %arg6: memref<128x128xf32, #tpu.memory_space<vmem>>, %arg7: memref<1x128xf32, #tpu.memory_space<vmem>>, %arg8: memref<1x128xf32, #tpu.memory_space<vmem>>, %arg9: memref<1x128xf32, #tpu.memory_space<vmem>>, %arg10: memref<2x128xf32, #tpu.memory_space<vmem>>) attributes {dimension_semantics = [#tpu.dimension_semantics<arbitrary>], iteration_bounds = array<i64: 1>, scalar_prefetch = 0 : i64, scratch_operands = 0 : i64, tpu.core_type = #tpu.core_type<tc>, window_params = [{pipeline_mode = #tpu.pipeline_mode<synchronous>, transform_indices = @transform_0, window_bounds = array<i64: 2, 128>}, {pipeline_mode = #tpu.pipeline_mode<synchronous>, transform_indices = @transform_1, window_bounds = array<i64: 128, 128>}, {pipeline_mode = #tpu.pipeline_mode<synchronous>, transform_indices = @transform_2, window_bounds = array<i64: 1, 128>}, {pipeline_mode = #tpu.pipeline_mode<synchronous>, transform_indices = @transform_3, window_bounds = array<i64: 1, 128>}, {pipeline_mode = #tpu.pipeline_mode<synchronous>, transform_indices = @transform_4, window_bounds = array<i64: 1, 128>}, {pipeline_mode = #tpu.pipeline_mode<synchronous>, transform_indices = @transform_5, window_bounds = array<i64: 128, 128>}, {pipeline_mode = #tpu.pipeline_mode<synchronous>, transform_indices = @transform_6, window_bounds = array<i64: 1, 128>}, {pipeline_mode = #tpu.pipeline_mode<synchronous>, transform_indices = @transform_7, window_bounds = array<i64: 1, 128>}, {pipeline_mode = #tpu.pipeline_mode<synchronous>, transform_indices = @transform_8, window_bounds = array<i64: 1, 128>}, {pipeline_mode = #tpu.pipeline_mode<synchronous>, transform_indices = @transform_9, window_bounds = array<i64: 2, 128>}]} {
    %c0 = arith.constant 0 : index
    %c0_0 = arith.constant 0 : index
    %0 = vector.load %arg1[%c0, %c0_0] : memref<2x128xf32, #tpu.memory_space<vmem>>, vector<2x128xf32>
    %c0_1 = arith.constant 0 : index
    %c0_2 = arith.constant 0 : index
    %1 = vector.load %arg2[%c0_1, %c0_2] : memref<128x128xf32, #tpu.memory_space<vmem>>, vector<128x128xf32>
    %c0_3 = arith.constant 0 : index
    %c0_4 = arith.constant 0 : index
    %2 = vector.load %arg3[%c0_3, %c0_4] : memref<1x128xf32, #tpu.memory_space<vmem>>, vector<1x128xf32>
    %c0_5 = arith.constant 0 : index
    %c0_6 = arith.constant 0 : index
    %3 = vector.load %arg4[%c0_5, %c0_6] : memref<1x128xf32, #tpu.memory_space<vmem>>, vector<1x128xf32>
    %c0_7 = arith.constant 0 : index
    %c0_8 = arith.constant 0 : index
    %4 = vector.load %arg5[%c0_7, %c0_8] : memref<1x128xf32, #tpu.memory_space<vmem>>, vector<1x128xf32>
    %cst = arith.constant dense<0.000000e+00> : vector<2x128xf32>
    %5 = tpu.matmul %0, %1, %cst {dimension_numbers = #tpu.dot_dimension_numbers<[1], [0], [0], [1], [0, 0, 1, 1], [], []>} : vector<2x128xf32>, vector<128x128xf32>, vector<2x128xf32> -> vector<2x128xf32>
    %6 = vector.broadcast %2 : vector<1x128xf32> to vector<2x128xf32>
    %7 = arith.addf %5, %6 : vector<2x128xf32>
    %cst_9 = arith.constant dense<0.000000e+00> : vector<128xf32>
    %8 = vector.multi_reduction <add>, %7, %cst_9 [0] : vector<2x128xf32> to vector<128xf32>
    %9 = vector.shape_cast %8 : vector<128xf32> to vector<1x128xf32>
    %cst_10 = arith.constant 2.000000e+00 : f32
    %10 = vector.broadcast %cst_10 : f32 to vector<1x128xf32>
    %11 = arith.divf %9, %10 : vector<1x128xf32>
    %12 = vector.broadcast %11 : vector<1x128xf32> to vector<2x128xf32>
    %13 = arith.subf %7, %12 : vector<2x128xf32>
    %14 = vector.broadcast %11 : vector<1x128xf32> to vector<2x128xf32>
    %15 = arith.subf %7, %14 : vector<2x128xf32>
    %16 = arith.mulf %13, %15 : vector<2x128xf32>
    %cst_11 = arith.constant dense<0.000000e+00> : vector<128xf32>
    %17 = vector.multi_reduction <add>, %16, %cst_11 [0] : vector<2x128xf32> to vector<128xf32>
    %18 = vector.shape_cast %17 : vector<128xf32> to vector<1x128xf32>
    %cst_12 = arith.constant 2.000000e+00 : f32
    %19 = vector.broadcast %cst_12 : f32 to vector<1x128xf32>
    %20 = arith.divf %18, %19 : vector<1x128xf32>
    %cst_13 = arith.constant 9.99999974E-6 : f32
    %21 = vector.broadcast %cst_13 : f32 to vector<1x128xf32>
    %22 = arith.addf %20, %21 : vector<1x128xf32>
    %23 = math.rsqrt %22 : vector<1x128xf32>
    %24 = arith.mulf %3, %23 : vector<1x128xf32>
    %25 = arith.mulf %11, %24 : vector<1x128xf32>
    %26 = arith.subf %4, %25 : vector<1x128xf32>
    %27 = vector.broadcast %24 : vector<1x128xf32> to vector<2x128xf32>
    %28 = arith.mulf %7, %27 : vector<2x128xf32>
    %29 = vector.broadcast %26 : vector<1x128xf32> to vector<2x128xf32>
    %30 = arith.addf %28, %29 : vector<2x128xf32>
    %31 = math.tanh %30 : vector<2x128xf32>
    %c0_14 = arith.constant 0 : index
    %c0_15 = arith.constant 0 : index
    %32 = vector.load %arg6[%c0_14, %c0_15] : memref<128x128xf32, #tpu.memory_space<vmem>>, vector<128x128xf32>
    %c0_16 = arith.constant 0 : index
    %c0_17 = arith.constant 0 : index
    %33 = vector.load %arg7[%c0_16, %c0_17] : memref<1x128xf32, #tpu.memory_space<vmem>>, vector<1x128xf32>
    %c0_18 = arith.constant 0 : index
    %c0_19 = arith.constant 0 : index
    %34 = vector.load %arg8[%c0_18, %c0_19] : memref<1x128xf32, #tpu.memory_space<vmem>>, vector<1x128xf32>
    %c0_20 = arith.constant 0 : index
    %c0_21 = arith.constant 0 : index
    %35 = vector.load %arg9[%c0_20, %c0_21] : memref<1x128xf32, #tpu.memory_space<vmem>>, vector<1x128xf32>
    %cst_22 = arith.constant dense<0.000000e+00> : vector<2x128xf32>
    %36 = tpu.matmul %31, %32, %cst_22 {dimension_numbers = #tpu.dot_dimension_numbers<[1], [0], [0], [1], [0, 0, 1, 1], [], []>} : vector<2x128xf32>, vector<128x128xf32>, vector<2x128xf32> -> vector<2x128xf32>
    %37 = vector.broadcast %33 : vector<1x128xf32> to vector<2x128xf32>
    %38 = arith.addf %36, %37 : vector<2x128xf32>
    %cst_23 = arith.constant dense<0.000000e+00> : vector<128xf32>
    %39 = vector.multi_reduction <add>, %38, %cst_23 [0] : vector<2x128xf32> to vector<128xf32>
    %40 = vector.shape_cast %39 : vector<128xf32> to vector<1x128xf32>
    %cst_24 = arith.constant 2.000000e+00 : f32
    %41 = vector.broadcast %cst_24 : f32 to vector<1x128xf32>
    %42 = arith.divf %40, %41 : vector<1x128xf32>
    %43 = vector.broadcast %42 : vector<1x128xf32> to vector<2x128xf32>
    %44 = arith.subf %38, %43 : vector<2x128xf32>
    %45 = vector.broadcast %42 : vector<1x128xf32> to vector<2x128xf32>
    %46 = arith.subf %38, %45 : vector<2x128xf32>
    %47 = arith.mulf %44, %46 : vector<2x128xf32>
    %cst_25 = arith.constant dense<0.000000e+00> : vector<128xf32>
    %48 = vector.multi_reduction <add>, %47, %cst_25 [0] : vector<2x128xf32> to vector<128xf32>
    %49 = vector.shape_cast %48 : vector<128xf32> to vector<1x128xf32>
    %cst_26 = arith.constant 2.000000e+00 : f32
    %50 = vector.broadcast %cst_26 : f32 to vector<1x128xf32>
    %51 = arith.divf %49, %50 : vector<1x128xf32>
    %cst_27 = arith.constant 9.99999974E-6 : f32
    %52 = vector.broadcast %cst_27 : f32 to vector<1x128xf32>
    %53 = arith.addf %51, %52 : vector<1x128xf32>
    %54 = math.rsqrt %53 : vector<1x128xf32>
    %55 = arith.mulf %34, %54 : vector<1x128xf32>
    %56 = arith.mulf %42, %55 : vector<1x128xf32>
    %57 = arith.subf %35, %56 : vector<1x128xf32>
    %58 = vector.broadcast %55 : vector<1x128xf32> to vector<2x128xf32>
    %59 = arith.mulf %38, %58 : vector<2x128xf32>
    %60 = vector.broadcast %57 : vector<1x128xf32> to vector<2x128xf32>
    %61 = arith.addf %59, %60 : vector<2x128xf32>
    %62 = math.tanh %61 : vector<2x128xf32>
    %c0_28 = arith.constant 0 : index
    %c0_29 = arith.constant 0 : index
    %63 = vector.load %arg10[%c0_28, %c0_29] : memref<2x128xf32, #tpu.memory_space<vmem>>, vector<2x128xf32>
    tpu.vector_store %arg10[%c0_28, %c0_29], %62 {strides = array<i32>} : memref<2x128xf32, #tpu.memory_space<vmem>>, vector<2x128xf32>,
    return
  }
  func.func @transform_0(%arg0: i32) -> (i32, i32) {
    %c0_i32 = arith.constant 0 : i32
    %c0_i32_0 = arith.constant 0 : i32
    %c0_i32_1 = arith.constant 0 : i32
    return %c0_i32, %c0_i32_0 : i32, i32
  }
  func.func @transform_1(%arg0: i32) -> (i32, i32) {
    %c0_i32 = arith.constant 0 : i32
    %c0_i32_0 = arith.constant 0 : i32
    %c0_i32_1 = arith.constant 0 : i32
    return %c0_i32, %c0_i32_0 : i32, i32
  }
  func.func @transform_2(%arg0: i32) -> (i32, i32) {
    %c0_i32 = arith.constant 0 : i32
    %c0_i32_0 = arith.constant 0 : i32
    %c0_i32_1 = arith.constant 0 : i32
    return %c0_i32, %c0_i32_0 : i32, i32
  }
  func.func @transform_3(%arg0: i32) -> (i32, i32) {
    %c0_i32 = arith.constant 0 : i32
    %c0_i32_0 = arith.constant 0 : i32
    %c0_i32_1 = arith.constant 0 : i32
    return %c0_i32, %c0_i32_0 : i32, i32
  }
  func.func @transform_4(%arg0: i32) -> (i32, i32) {
    %c0_i32 = arith.constant 0 : i32
    %c0_i32_0 = arith.constant 0 : i32
    %c0_i32_1 = arith.constant 0 : i32
    return %c0_i32, %c0_i32_0 : i32, i32
  }
  func.func @transform_5(%arg0: i32) -> (i32, i32) {
    %c0_i32 = arith.constant 0 : i32
    %c0_i32_0 = arith.constant 0 : i32
    %c0_i32_1 = arith.constant 0 : i32
    return %c0_i32, %c0_i32_0 : i32, i32
  }
  func.func @transform_6(%arg0: i32) -> (i32, i32) {
    %c0_i32 = arith.constant 0 : i32
    %c0_i32_0 = arith.constant 0 : i32
    %c0_i32_1 = arith.constant 0 : i32
    return %c0_i32, %c0_i32_0 : i32, i32
  }
  func.func @transform_7(%arg0: i32) -> (i32, i32) {
    %c0_i32 = arith.constant 0 : i32
    %c0_i32_0 = arith.constant 0 : i32
    %c0_i32_1 = arith.constant 0 : i32
    return %c0_i32, %c0_i32_0 : i32, i32
  }
  func.func @transform_8(%arg0: i32) -> (i32, i32) {
    %c0_i32 = arith.constant 0 : i32
    %c0_i32_0 = arith.constant 0 : i32
    %c0_i32_1 = arith.constant 0 : i32
    return %c0_i32, %c0_i32_0 : i32, i32
  }
  func.func @transform_9(%arg0: i32) -> (i32, i32) {
    %c0_i32 = arith.constant 0 : i32
    %c0_i32_0 = arith.constant 0 : i32
    %c0_i32_1 = arith.constant 0 : i32
    return %c0_i32, %c0_i32_0 : i32, i32
  }
}

module attributes {stable_mosaic.version = 11 : i64} {
  func.func @_out_tile_kernel(%arg0: i32, %arg1: memref<2x128xf32, #tpu.memory_space<vmem>>, %arg2: memref<128x128xbf16, #tpu.memory_space<vmem>>, %arg3: memref<1x128xf32, #tpu.memory_space<vmem>>, %arg4: memref<2x128xf32, #tpu.memory_space<vmem>>) attributes {dimension_semantics = [#tpu.dimension_semantics<parallel>], iteration_bounds = array<i64: 1>, scalar_prefetch = 0 : i64, scratch_operands = 0 : i64, tpu.core_type = #tpu.core_type<tc>, window_params = [{pipeline_mode = #tpu.pipeline_mode<synchronous>, transform_indices = @transform_0, window_bounds = array<i64: 2, 128>}, {transform_indices = @transform_1, window_bounds = array<i64: 128, 128>}, {transform_indices = @transform_2, window_bounds = array<i64: 1, 128>}, {transform_indices = @transform_3, window_bounds = array<i64: 2, 128>}]} {
    %c0 = arith.constant 0 : index
    %c0_0 = arith.constant 0 : index
    %0 = vector.load %arg1[%c0, %c0_0] : memref<2x128xf32, #tpu.memory_space<vmem>>, vector<2x128xf32>
    %1 = arith.truncf %0 : vector<2x128xf32> to vector<2x128xbf16>
    %c0_1 = arith.constant 0 : index
    %c0_2 = arith.constant 0 : index
    %2 = vector.load %arg2[%c0_1, %c0_2] : memref<128x128xbf16, #tpu.memory_space<vmem>>, vector<128x128xbf16>
    %cst = arith.constant dense<0.000000e+00> : vector<2x128xf32>
    %3 = tpu.matmul %1, %2, %cst {dimension_numbers = #tpu.dot_dimension_numbers<[1], [0], [0], [1], [0, 0, 1, 1], [], []>} : vector<2x128xbf16>, vector<128x128xbf16>, vector<2x128xf32> -> vector<2x128xf32>
    %c0_3 = arith.constant 0 : index
    %c0_4 = arith.constant 0 : index
    %4 = vector.load %arg3[%c0_3, %c0_4] : memref<1x128xf32, #tpu.memory_space<vmem>>, vector<1x128xf32>
    %5 = vector.broadcast %4 : vector<1x128xf32> to vector<2x128xf32>
    %6 = arith.addf %3, %5 : vector<2x128xf32>
    %c0_5 = arith.constant 0 : index
    %c0_6 = arith.constant 0 : index
    %7 = vector.load %arg4[%c0_5, %c0_6] : memref<2x128xf32, #tpu.memory_space<vmem>>, vector<2x128xf32>
    tpu.vector_store %arg4[%c0_5, %c0_6], %6 {strides = array<i32>} : memref<2x128xf32, #tpu.memory_space<vmem>>, vector<2x128xf32>,
    return
  }
  func.func @transform_0(%arg0: i32) -> (i32, i32) {
    %c0_i32 = arith.constant 0 : i32
    %c0_i32_0 = arith.constant 0 : i32
    %c0_i32_1 = arith.constant 0 : i32
    return %c0_i32, %c0_i32_0 : i32, i32
  }
  func.func @transform_1(%arg0: i32) -> (i32, i32) {
    %c0_i32 = arith.constant 0 : i32
    %c0_i32_0 = arith.constant 0 : i32
    return %c0_i32, %arg0 : i32, i32
  }
  func.func @transform_2(%arg0: i32) -> (i32, i32) {
    %c0_i32 = arith.constant 0 : i32
    %c0_i32_0 = arith.constant 0 : i32
    return %c0_i32, %arg0 : i32, i32
  }
  func.func @transform_3(%arg0: i32) -> (i32, i32) {
    %c0_i32 = arith.constant 0 : i32
    %c0_i32_0 = arith.constant 0 : i32
    return %c0_i32, %arg0 : i32, i32
  }
}

</mosaic_0001>

<bundles_post_ra>
// kernel: generator_forward.2
= control target key start
LH: loop header
LB: loop body
LE: loop exit
PB: predicated region body
PF: predicated region fallthrough
CT: control target
= control target key end

     0   :  { %14 = vsyncpa [#allocation3], 0  ;;  %s678_s0 = inlined_call_operand.vmem [shape: f32[2,128], index: 0, kind: input, shape index: {}]   ;;  %s679_s1 = inlined_call_operand.hbm [shape: f32[128,128], index: 1, kind: input, shape index: {}]   ;;  %s680_s2 = inlined_call_operand.vmem [shape: f32[1,128], index: 2, kind: input, shape index: {}]   ;;  %s681_s3 = inlined_call_operand.vmem [shape: f32[1,128], index: 3, kind: input, shape index: {}]   ;;  %s682_s4 = inlined_call_operand.vmem [shape: f32[1,128], index: 4, kind: input, shape index: {}]   ;;  %s683_s5 = inlined_call_operand.hbm [shape: f32[128,128], index: 5, kind: input, shape index: {}]   ;;  %s684_s6 = inlined_call_operand.vmem [shape: f32[1,128], index: 6, kind: input, shape index: {}]   ;;  %s685_s7 = inlined_call_operand.vmem [shape: f32[1,128], index: 7, kind: input, shape index: {}]   ;;  %s686_s8 = inlined_call_operand.vmem [shape: f32[1,128], index: 8, kind: input, shape index: {}]   ;;  %s687_s9 = inlined_call_operand.vmem [shape: f32[2,128], index: 9, kind: output, shape index: {}]  }
   0x1   :  { %15 = vsyncpa [#allocation5], 0  ;;  %s553_s30 = smov [#allocation2]   ;;  %s505_s13 = scalar_lea.hbm %s679_s1, 2048 }
   0x2   :  { %s23_s10 = sshll.u32 %s553_s30, 4  ;;  %p506_p0 = scmp.ne.s32.totalorder %s679_s1, %s505_s13  ;;  %s24_s10 = int_to_ptr.vmem [resolvable:$true] %s23_s10 }
   0x3   :  { %p509_p1 = scmp.lt.u32.totalorder %s505_s13, %s679_s1 }
   0x5   :  { %p511_p2 = pnand %p509_p1, %p506_p0 }
   0x7   :  { %514 = shalt.err (!%p511_p2)
}
   0x8   :  { %s515_s18 = scalar_lea.vmem %s24_s10, 2048  ;;  %p520_p4 = scmp.lt.s32.totalorder %s24_s10, %s24_s10 }
   0x9   :  { %p516_p3 = scmp.ne.s32.totalorder %s24_s10, %s515_s18  ;;  %p521_p5 = scmp.lt.s32.totalorder %s515_s18, %s515_s18 }
   0xb   :  { %p522_p6 = por %p521_p5, %p520_p4 }
   0xd   :  { %p523_p7 = pnand %p522_p6, %p516_p3 }
   0xf   :  { %526 = shalt.err (!%p523_p7)
}
  0x10   :  { %s554_s19 = smov 128   ;;  %s555_s20 = smov 8  }
  0x11   :  { %29 = dma.hbm_to_vmem [thread:$0]  %s679_s1, 2048, %s24_s10, [#allocation3], %s554_s19, %s554_s19, %s555_s20  }
  0x12   :  { %s556_s23 = smov [#allocation4]   ;;  %s527_s27 = scalar_lea.hbm %s683_s5, 2048 }
  0x13   :  { %s41_s24 = sshll.u32 %s556_s23, 4  ;;  %p528_p8 = scmp.ne.s32.totalorder %s683_s5, %s527_s27  ;;  %s42_s24 = int_to_ptr.vmem [resolvable:$true] %s41_s24 }
  0x14   :  { %p531_p9 = scmp.lt.u32.totalorder %s527_s27, %s683_s5 }
  0x16   :  { %p533_p10 = pnand %p531_p9, %p528_p8 }
  0x18   :  { %536 = shalt.err (!%p533_p10)
}
  0x19   :  { %s537_s12 = scalar_lea.vmem %s42_s24, 2048  ;;  %p542_p12 = scmp.lt.s32.totalorder %s42_s24, %s42_s24 }
  0x1a   :  { %p538_p11 = scmp.ne.s32.totalorder %s42_s24, %s537_s12  ;;  %p543_p13 = scmp.lt.s32.totalorder %s537_s12, %s537_s12 }
  0x1c   :  { %p544_p0 = por %p543_p13, %p542_p12 }
  0x1e   :  { %p545_p1 = pnand %p544_p0, %p538_p11 }
  0x20   :  { %548 = shalt.err (!%p545_p1)
}
  0x21   :  { %47 = dma.hbm_to_vmem [thread:$0]  %s683_s5, 2048, %s42_s24, [#allocation5], %s554_s19, %s554_s19, %s555_s20  }
  0x22   :  { %549 = dma.done.wait [#allocation3], 2048  }
  0x23   :  { %550 = vsyncadd [#allocation3], 4294965248 }
  0x24   :  { %551 = dma.done.wait [#allocation5], 2048  }
  0x25   :  { %552 = vsyncadd [#allocation5], 4294965248  ;;  %v557_v0 = vmov 0.0|0.0   ;;  %vm558_vm0 = vmmov 0   ;;  %v559_v1 = vmov 0.0   ;;  %v61_v2 = vld [vmem:[#allocation2] sm:$0xff] }
  0x26   :  { %442 = vmatprep.subr.bf16.mxu0 %v557_v0  ;;  %404 = vmatprep.mubr.msk.f32.mxu0 %vm558_vm0, %v559_v1  ;;  %v62_v3 = vld [vmem:[#allocation2 + $0x8] sm:$0xff]  ;;  %v63_v4 = vld [vmem:[#allocation2 + $0x10] sm:$0xff]  ;;  %v64_v6 = vld [vmem:[#allocation2 + $0x18] sm:$0xff]  ;;  %vm156_vm1 = vcmask 1041408  }
  0x27   :  { %466 = vmatprep.subr.bf16.mxu1 %v557_v0  ;;  %439 = vmatprep.mubr.msk.f32.mxu1 %vm558_vm0, %v559_v1  ;;  %v443_v5 = vpack.c.bf16 %v62_v3, %v61_v2  ;;  %v446_v7 = vpack.c.bf16 %v64_v6, %v63_v4  ;;  %v65_v8 = vld [vmem:[#allocation2 + $0x20] sm:$0xff]  ;;  %v66_v9 = vld [vmem:[#allocation2 + $0x28] sm:$0xff]  ;;  %v67_v11 = vld [vmem:[#allocation2 + $0x30] sm:$0xff] }
  0x28   :  { %v449_v10 = vpack.c.bf16 %v66_v9, %v65_v8  ;;  %v68_v12 = vld [vmem:[#allocation2 + $0x38] sm:$0xff]  ;;  %v69_v14 = vld [vmem:[#allocation2 + $0x40] sm:$0xff]  ;;  %v70_v15 = vld [vmem:[#allocation2 + $0x48] sm:$0xff] }
  0x29   :  { %444 = vmatpush3.bf16.msra.mxu0 %v443_v5  ;;  %v452_v13 = vpack.c.bf16 %v68_v12, %v67_v11  ;;  %v455_v16 = vpack.c.bf16 %v70_v15, %v69_v14  ;;  %v71_v17 = vld [vmem:[#allocation2 + $0x50] sm:$0xff]  ;;  %v72_v18 = vld [vmem:[#allocation2 + $0x58] sm:$0xff]  ;;  %v73_v20 = vld [vmem:[#allocation2 + $0x60] sm:$0xff] }
  0x2a   :  { %445 = vmatprep.subr.bf16.mxu0 %v557_v0  ;;  %v458_v19 = vpack.c.bf16 %v72_v18, %v71_v17  ;;  %v74_v21 = vld [vmem:[#allocation2 + $0x68] sm:$0xff]  ;;  %v75_v23 = vld [vmem:[#allocation2 + $0x70] sm:$0xff]  ;;  %v76_v24 = vld [vmem:[#allocation2 + $0x78] sm:$0xff] }
  0x2b   :  { %v461_v22 = vpack.c.bf16 %v74_v21, %v73_v20  ;;  %v464_v25 = vpack.c.bf16 %v76_v24, %v75_v23  ;;  %v60_v26 = vld [vmem:[%s678_s0] sm:$0x3]  ;;  %v197_v28 = vld [vmem:[#allocation4 + $0x8] sm:$0xff]  ;;  %v198_v30 = vld [vmem:[#allocation4 + $0x10] sm:$0xff] }
  0x2c   :  { %v196_v27 = vld [vmem:[#allocation4] sm:$0xff]  ;;  %v199_v31 = vld [vmem:[#allocation4 + $0x18] sm:$0xff]  ;;  %v201_v34 = vld [vmem:[#allocation4 + $0x28] sm:$0xff] }
  0x2d   :  { %447 = vmatpush3.bf16.msra.mxu0 %v446_v7  ;;  %v467_v29 = vpack.c.bf16 %v197_v28, %v196_v27  ;;  %v470_v32 = vpack.c.bf16 %v199_v31, %v198_v30  ;;  %v200_v33 = vld [vmem:[#allocation4 + $0x20] sm:$0xff]  ;;  %v202_v36 = vld [vmem:[#allocation4 + $0x30] sm:$0xff]  ;;  %v203_v37 = vld [vmem:[#allocation4 + $0x38] sm:$0xff] }
  0x2e   :  { %448 = vmatprep.subr.bf16.mxu0 %v557_v0  ;;  %v473_v35 = vpack.c.bf16 %v201_v34, %v200_v33  ;;  %v476_v38 = vpack.c.bf16 %v203_v37, %v202_v36  ;;  %v204_v39 = vld [vmem:[#allocation4 + $0x40] sm:$0xff]  ;;  %v205_v40 = vld [vmem:[#allocation4 + $0x48] sm:$0xff]  ;;  %v206_v42 = vld [vmem:[#allocation4 + $0x50] sm:$0xff] }
  0x2f   :  { %468 = vmatpush3.bf16.msra.mxu1 %v467_v29  ;;  %v479_v41 = vpack.c.bf16 %v205_v40, %v204_v39  ;;  %v207_v43 = vld [vmem:[#allocation4 + $0x58] sm:$0xff]  ;;  %v208_v45 = vld [vmem:[#allocation4 + $0x60] sm:$0xff]  ;;  %v209_v46 = vld [vmem:[#allocation4 + $0x68] sm:$0xff] }
  0x30   :  { %469 = vmatprep.subr.bf16.mxu1 %v557_v0  ;;  %v482_v44 = vpack.c.bf16 %v207_v43, %v206_v42  ;;  %v485_v47 = vpack.c.bf16 %v209_v46, %v208_v45  ;;  %v210_v48 = vld [vmem:[#allocation4 + $0x70] sm:$0xff]  ;;  %v211_v49 = vld [vmem:[#allocation4 + $0x78] sm:$0xff]  ;;  %v336_v51 = vld [vmem:[%s680_s2] ss:$0 sm:$0xff] }
  0x31   :  { %450 = vmatpush3.bf16.msra.mxu0 %v449_v10  ;;  %v488_v50 = vpack.c.bf16 %v211_v49, %v210_v48  ;;  %v182_v10 = vlaneseq  ;;  %v78_v12 = vld [vmem:[%s681_s3] sm:$0x1] }
  0x32   :  { %451 = vmatprep.subr.bf16.mxu0 %v557_v0  ;;  %v337_v24 = vld [vmem:[%s684_s6] ss:$0 sm:$0xff] }
  0x33   :  { %471 = vmatpush3.bf16.msra.mxu1 %v470_v32  ;;  %v183_v11 = vshrl.u32 %v182_v10, 7 }
  0x34   :  { %472 = vmatprep.subr.bf16.mxu1 %v557_v0 }
  0x35   :  { %453 = vmatpush3.bf16.msra.mxu0 %v452_v13  ;;  %v184_v13 = vsub.s32 0, %v183_v11 }
  0x36   :  { %454 = vmatprep.subr.bf16.mxu0 %v557_v0 }
  0x37   :  { %474 = vmatpush3.bf16.msra.mxu1 %v473_v35 }
  0x38   :  { %475 = vmatprep.subr.bf16.mxu1 %v557_v0 }
  0x39   :  { %456 = vmatpush3.bf16.msra.mxu0 %v455_v16  ;;  %v79_v16 = vld [vmem:[%s682_s4] sm:$0x1] }
  0x3a   :  { %457 = vmatprep.subr.bf16.mxu0 %v557_v0 }
  0x3b   :  { %477 = vmatpush3.bf16.msra.mxu1 %v476_v38 }
  0x3c   :  { %478 = vmatprep.subr.bf16.mxu1 %v557_v0 }
  0x3d   :  { %459 = vmatpush3.bf16.msra.mxu0 %v458_v19 }
  0x3e   :  { %460 = vmatprep.subr.bf16.mxu0 %v557_v0 }
  0x3f   :  { %480 = vmatpush3.bf16.msra.mxu1 %v479_v41 }
  0x40   :  { %481 = vmatprep.subr.bf16.mxu1 %v557_v0 }
  0x41   :  { %462 = vmatpush3.bf16.msra.mxu0 %v461_v22 }
  0x42   :  { %463 = vmatprep.subr.bf16.mxu0 %v557_v0 }
  0x43   :  { %483 = vmatpush3.bf16.msra.mxu1 %v482_v44 }
  0x44   :  { %484 = vmatprep.subr.bf16.mxu1 %v557_v0 }
  0x45   :  { %465 = vmatpush3.bf16.msra.mxu0 %v464_v25 }
  0x47   :  { %486 = vmatpush3.bf16.msra.mxu1 %v485_v47  ;;  %v213_v47 = vld [vmem:[%s685_s7] sm:$0x1] }
  0x48   :  { %405 = vmatmul.mubr.f32.vlgmr.msra.gmra.mrb[0].mxu0 %v60_v26  ;;  %487 = vmatprep.subr.bf16.mxu1 %v557_v0 }
  0x4b   :  { %489 = vmatpush3.bf16.msra.mxu1 %v488_v50  ;;  %v214_v50 = vld [vmem:[%s686_s8] sm:$0x1] }
 0x11b   :  { %v152_v52 = vpop.f32.mrb[0].mxu0 }
 0x11c   :  { %v153_v53 = vadd.f32 %v336_v51, %v152_v52  ;;  %v406_v54 = vpop.f32.mrb[1].mxu0 }
 0x11e   :  { %v157_v55 = vsel %vm156_vm1, %v153_v53, 0.0 }
 0x11f   :  { %v158_v56 = vrot.slane %v157_v55, 4 }
 0x121   :  { %v159_v57 = vadd.f32 %v158_v56, %v157_v55 }
 0x123   :  { %v160_v58 = vrot.slane %v159_v57, 2 }
 0x125   :  { %v161_v59 = vadd.f32 %v160_v58, %v159_v57 }
 0x127   :  { %v162_v60 = vrot.slane %v161_v59, 1 }
 0x129   :  { %v163_v61 = vadd.f32 %v162_v60, %v161_v59 }
 0x12b   :  { %v165_v62 = vmul.f32 0.5, %v163_v61 }
 0x12d   :  { %v166_v63 = vsub.f32 %v153_v53, %v165_v62 }
 0x12f   :  { %v167_v0 = vmul.f32 %v166_v63, %v166_v63 }
 0x131   :  { %v168_v1 = vsel %vm156_vm1, %v167_v0, 0.0 }
 0x132   :  { %v169_v2 = vrot.slane %v168_v1, 4 }
 0x134   :  { %v170_v3 = vadd.f32 %v169_v2, %v168_v1 }
 0x136   :  { %v171_v4 = vrot.slane %v170_v3, 2 }
 0x138   :  { %v172_v5 = vadd.f32 %v171_v4, %v170_v3 }
 0x13a   :  { %v173_v6 = vrot.slane %v172_v5, 1 }
 0x13c   :  { %v174_v7 = vadd.f32 %v173_v6, %v172_v5 }
 0x13e   :  { %v175_v8 = vmul.f32 0.5, %v174_v7 }
 0x140   :  { %v176_v9 = vadd.f32 1e-05, %v175_v8 }
 0x142   :  { %497 = vrsqrt.f32 %v176_v9 }
 0x14c   :  { %v498_v14 = vpop.eup %497 }
 0x14d   :  { %v178_v15 = vmul.f32 %v498_v14, %v78_v12 }
 0x14f   :  { %v179_v17 = vmul.f32 %v178_v15, %v165_v62  ;;  %v185_v18 = vrot.slane %v178_v15, %v184_v13 }
 0x151   :  { %v180_v19 = vsub.f32 %v79_v16, %v179_v17  ;;  %v187_v20 = vmul.f32 %v185_v18, %v153_v53 }
 0x153   :  { %v192_v21 = vrot.slane %v180_v19, %v184_v13 }
 0x155   :  { %v194_v22 = vadd.f32 %v192_v21, %v187_v20 }
 0x157   :  { %499 = vtanh.f32 %v194_v22 }
 0x161   :  { %v500_v23 = vpop.eup %499 }
 0x162   :  { %440 = vmatmul.mubr.f32.vlgmr.msra.gmra.mrb[0].mxu1 %v500_v23 }
 0x235   :  { %v287_v25 = vpop.f32.mrb[0].mxu1 }
 0x236   :  { %v288_v26 = vadd.f32 %v337_v24, %v287_v25  ;;  %v441_v27 = vpop.f32.mrb[1].mxu1 }
 0x238   :  { %v291_v28 = vsel %vm156_vm1, %v288_v26, 0.0 }
 0x239   :  { %v292_v29 = vrot.slane %v291_v28, 4 }
 0x23b   :  { %v293_v30 = vadd.f32 %v292_v29, %v291_v28 }
 0x23d   :  { %v294_v31 = vrot.slane %v293_v30, 2 }
 0x23f   :  { %v295_v32 = vadd.f32 %v294_v31, %v293_v30 }
 0x241   :  { %v296_v33 = vrot.slane %v295_v32, 1 }
 0x243   :  { %v297_v34 = vadd.f32 %v296_v33, %v295_v32 }
 0x245   :  { %v298_v35 = vmul.f32 0.5, %v297_v34 }
 0x247   :  { %v299_v36 = vsub.f32 %v288_v26, %v298_v35 }
 0x249   :  { %v300_v37 = vmul.f32 %v299_v36, %v299_v36 }
 0x24b   :  { %v301_v38 = vsel %vm156_vm1, %v300_v37, 0.0 }
 0x24c   :  { %v302_v39 = vrot.slane %v301_v38, 4 }
 0x24e   :  { %v303_v40 = vadd.f32 %v302_v39, %v301_v38 }
 0x250   :  { %v304_v41 = vrot.slane %v303_v40, 2 }
 0x252   :  { %v305_v42 = vadd.f32 %v304_v41, %v303_v40 }
 0x254   :  { %v306_v43 = vrot.slane %v305_v42, 1 }
 0x256   :  { %v307_v44 = vadd.f32 %v306_v43, %v305_v42 }
 0x258   :  { %v308_v45 = vmul.f32 0.5, %v307_v44 }
 0x25a   :  { %v309_v46 = vadd.f32 1e-05, %v308_v45 }
 0x25c   :  { %501 = vrsqrt.f32 %v309_v46 }
 0x266   :  { %v502_v48 = vpop.eup %501 }
 0x267   :  { %v311_v49 = vmul.f32 %v502_v48, %v213_v47 }
 0x269   :  { %v312_v51 = vmul.f32 %v311_v49, %v298_v35  ;;  %v318_v52 = vrot.slane %v311_v49, %v184_v13 }
 0x26b   :  { %v313_v53 = vsub.f32 %v214_v50, %v312_v51  ;;  %v320_v54 = vmul.f32 %v318_v52, %v288_v26 }
 0x26d   :  { %v325_v55 = vrot.slane %v313_v53, %v184_v13 }
 0x26f   :  { %v327_v56 = vadd.f32 %v325_v55, %v320_v54 }
 0x271   :  { %503 = vtanh.f32 %v327_v56 }
 0x27b   :  { %v504_v57 = vpop.eup %503 }
 0x27c   :  { %329 = vst [vmem:[%s687_s9] sm:$0x3] %v504_v57 }
 0x27d   :  { %334 = vsyncpa [#allocation3], 1 }
 0x27e   :  { %335 = vsyncpa [#allocation5], 1 }

// kernel: generator_forward.3
= control target key start
LH: loop header
LB: loop body
LE: loop exit
PB: predicated region body
PF: predicated region fallthrough
CT: control target
= control target key end

     0   :  { %v181_v0 = vmov 0.0   ;;  %vm182_vm0 = vmmov 0   ;;  %s236_s1 = inlined_call_operand.vmem [shape: bf16[128,128], index: 1, kind: input, shape index: {}]   ;;  %s237_s0 = inlined_call_operand.vmem [shape: f32[2,128], index: 0, kind: input, shape index: {}]   ;;  %s238_s2 = inlined_call_operand.vmem [shape: f32[1,128], index: 2, kind: input, shape index: {}]   ;;  %s239_s3 = inlined_call_operand.vmem [shape: f32[2,128], index: 3, kind: output, shape index: {}]  }
   0x1   :  { %151 = vmatprep.subr.bf16.mxu0 %v181_v0  ;;  %v173_v1 = vld [vmem:[%s236_s1] sm:$0xff]   ;;  %167 = vmatprep.mubr.msk.bf16.mxu0 %vm182_vm0, %v181_v0  ;;  %v174_v2 = vld [vmem:[%s236_s1 + $0x8] sm:$0xff]   ;;  %v175_v3 = vld [vmem:[%s236_s1 + $0x10] sm:$0xff]  }
   0x2   :  { %152 = vmatpush3.bf16.msra.mxu0 %v173_v1  ;;  %v176_v4 = vld [vmem:[%s236_s1 + $0x18] sm:$0xff]   ;;  %v177_v5 = vld [vmem:[%s236_s1 + $0x20] sm:$0xff]   ;;  %v178_v6 = vld [vmem:[%s236_s1 + $0x28] sm:$0xff]  }
   0x3   :  { %153 = vmatprep.subr.bf16.mxu0 %v181_v0  ;;  %v179_v7 = vld [vmem:[%s236_s1 + $0x30] sm:$0xff]   ;;  %v180_v8 = vld [vmem:[%s236_s1 + $0x38] sm:$0xff]   ;;  %v15_v9 = vld [vmem:[%s237_s0] sm:$0x3] }
   0x4   :  { %v16_v10 = vpack.c.bf16 %v15_v9, %v15_v9  ;;  %v133_v11 = vld [vmem:[%s238_s2] ss:$0 sm:$0xff] }
   0x6   :  { %154 = vmatpush3.bf16.msra.mxu0 %v174_v2 }
   0x7   :  { %155 = vmatprep.subr.bf16.mxu0 %v181_v0 }
   0xa   :  { %156 = vmatpush3.bf16.msra.mxu0 %v175_v3 }
   0xb   :  { %157 = vmatprep.subr.bf16.mxu0 %v181_v0 }
   0xe   :  { %158 = vmatpush3.bf16.msra.mxu0 %v176_v4 }
   0xf   :  { %159 = vmatprep.subr.bf16.mxu0 %v181_v0 }
  0x12   :  { %160 = vmatpush3.bf16.msra.mxu0 %v177_v5 }
  0x13   :  { %161 = vmatprep.subr.bf16.mxu0 %v181_v0 }
  0x16   :  { %162 = vmatpush3.bf16.msra.mxu0 %v178_v6 }
  0x17   :  { %163 = vmatprep.subr.bf16.mxu0 %v181_v0 }
  0x1a   :  { %164 = vmatpush3.bf16.msra.mxu0 %v179_v7 }
  0x1b   :  { %165 = vmatprep.subr.bf16.mxu0 %v181_v0 }
  0x1e   :  { %166 = vmatpush3.bf16.msra.mxu0 %v180_v8 }
  0x21   :  { %168 = vmatmul.mubr.bf16.vlgmr.msra.gmra.mrb[0].mxu0 %v16_v10 }
  0xf4   :  { %v122_v12 = vpop.f32.mrb[0].mxu0 }
  0xf5   :  { %v123_v13 = vadd.f32 %v133_v11, %v122_v12  ;;  %v169_v14 = vpop.f32.mrb[1].mxu0 }
  0xf6   :  { %v125_v15 = vpop.f32.mrb[2].mxu0 }
  0xf7   :  { %128 = vst [vmem:[%s239_s3] sm:$0x3] %v123_v13  ;;  %v170_v16 = vpop.f32.mrb[3].mxu0 }

</bundles_post_ra>
